<compile_context>
chip_gen: v7x
topology: tpu7x:2x2x1
jax: 0.10.0
libtpu: 0.0.40
codegen_flags: <defaults>
</compile_context>

<pallas_src>
import math

import jax
import jax.numpy as jnp
import numpy as np
from jax.experimental import pallas as pl
from jax.experimental.pallas import tpu as pltpu

# ---------------- model hyper-params (small, consistent with the module) ----
D_MODEL = 32
HEADS = 4
HEAD_DIM = D_MODEL // HEADS
SEQ = 8            # context_length
BATCH = 2
INTER = 4 * D_MODEL
EPS = 1e-6


def _rms(t, eps):
    return t * jax.lax.rsqrt(jnp.mean(t * t, axis=-1, keepdims=True) + eps)


# ---------------------------- Pallas kernel ---------------------------------
def transformer_block_kernel(x_ref, mask_ref, wqkv_ref, wo_ref, w13_ref, b13_ref,
                             w2_ref, b2_ref, o_ref):
    x = x_ref[...]                                  # (N, D) float32
    mask_add = mask_ref[...]                        # (N, N) float32, 0 / -1e30

    # attention_norm (learnable weight unused in reference forward)
    h1 = _rms(x, EPS)

    # --- fused QKV projection (scale folded into Wq; bf16 MXU operands) -----
    qkv = jnp.dot(h1.astype(jnp.bfloat16), wqkv_ref[...],
                  preferred_element_type=jnp.float32)            # (N, 3D)
    q = qkv[:, :D_MODEL].astype(jnp.bfloat16)
    k = qkv[:, D_MODEL:2 * D_MODEL].astype(jnp.bfloat16)
    v = qkv[:, 2 * D_MODEL:].astype(jnp.bfloat16)

    heads_out = []
    for h in range(HEADS):                          # static unroll over heads
        sl = slice(h * HEAD_DIM, (h + 1) * HEAD_DIM)
        qh, kh, vh = q[:, sl], k[:, sl], v[:, sl]
        # q @ k^T without an explicit transpose: contract dim 1 of both.
        s = jax.lax.dot_general(qh, kh, (((1,), (1,)), ((), ())),
                                preferred_element_type=jnp.float32)  # (N, N)
        s = s + mask_add
        s = s - jnp.max(s, axis=-1, keepdims=True)
        p = jnp.exp(s)
        p = p / jnp.sum(p, axis=-1, keepdims=True)   # exact softmax denom
        oh = jnp.dot(p.astype(jnp.bfloat16), vh,
                     preferred_element_type=jnp.float32)             # (N, HD)
        heads_out.append(oh)

    # one fused output projection for all heads
    oh_all = jnp.concatenate(heads_out, axis=1).astype(jnp.bfloat16)  # (N, D)
    attn = jnp.dot(oh_all, wo_ref[...], preferred_element_type=jnp.float32)

    # residual on the normalized x (as in the reference forward)
    h2 = h1 + attn

    # --- SwiGLU feed-forward (fused W1||W3) ----------------------------------
    h3 = _rms(h2, EPS)                              # ffn_norm (weight unused)
    gu = jnp.dot(h3.astype(jnp.bfloat16), w13_ref[...],
                 preferred_element_type=jnp.float32) + b13_ref[...]
    g = gu[:, :INTER]
    u = gu[:, INTER:]
    silu = g * (1.0 / (1.0 + jnp.exp(-g)))          # exact sigmoid (F.silu)
    ff = jnp.dot((silu * u).astype(jnp.bfloat16), w2_ref[...],
                 preferred_element_type=jnp.float32) + b2_ref[...]

    o_ref[...] = (h2 + ff).astype(o_ref.dtype)


# ------------------------------ wrapper --------------------------------------
def prepare_params(wq, wk, wv, wo, w1, b1, w2, b2, w3, b3):
    """One-time parameter prep: fold attention scale into Wq, fuse QKV and
    W1/W3, and cast matmul weights to bf16 (biases stay f32)."""
    scale = 1.0 / math.sqrt(HEAD_DIM)
    wqkv = jnp.concatenate([wq * scale, wk, wv], axis=1).astype(jnp.bfloat16)  # (D, 3D)
    w13 = jnp.concatenate([w1, w3], axis=1).astype(jnp.bfloat16)               # (D, 2*INTER)
    b13 = jnp.concatenate([b1, b3], axis=1)                                    # (1, 2*INTER) f32
    return (wqkv, wo.astype(jnp.bfloat16), w13, b13,
            w2.astype(jnp.bfloat16), b2)


def _build_mask(B, S):
    """Additive block-diagonal causal mask over the flattened (B*S) axis."""
    N = B * S
    row = np.arange(N)[:, None]
    col = np.arange(N)[None, :]
    allowed = (col <= row) & ((row // S) == (col // S))
    return jnp.asarray(np.where(allowed, 0.0, -1e30), dtype=jnp.float32)


def transformer_block_tp(x, fused_params):
    B, S, D = x.shape
    N = B * S
    x2 = x.reshape(N, D)
    mask_add = _build_mask(B, S)

    def full(shape):
        nd = len(shape)
        return pl.BlockSpec(shape, lambda i, _nd=nd: (0,) * _nd)

    wqkv, wo, w13, b13, w2, b2 = fused_params
    in_specs = [
        full((N, D)),
        full((N, N)),
        full(wqkv.shape), full(wo.shape),
        full(w13.shape), full(b13.shape),
        full(w2.shape), full(b2.shape),
    ]

    out = pl.pallas_call(
        transformer_block_kernel,
        out_shape=jax.ShapeDtypeStruct((N, D), x.dtype),
        grid_spec=pltpu.PrefetchScalarGridSpec(
            num_scalar_prefetch=0,
            grid=(1,),                       # single step: whole problem in VMEM
            in_specs=in_specs,
            out_specs=full((N, D)),
        ),
        compiler_params=pltpu.CompilerParams(
            dimension_semantics=("arbitrary",)),
    )(x2, mask_add, *fused_params)
    return out.reshape(B, S, D)


# ------------------------- pure-JAX reference --------------------------------
def reference(x, wq, wk, wv, wo, w1, b1, w2, b2, w3, b3):
    h1 = _rms(x, EPS)
    B, S, D = x.shape
    q = (h1 @ wq).reshape(B, S, HEADS, HEAD_DIM).transpose(0, 2, 1, 3)
    k = (h1 @ wk).reshape(B, S, HEADS, HEAD_DIM).transpose(0, 2, 1, 3)
    v = (h1 @ wv).reshape(B, S, HEADS, HEAD_DIM).transpose(0, 2, 1, 3)
    scores = jnp.einsum("bhqd,bhkd->bhqk", q, k) / math.sqrt(HEAD_DIM)
    mask = jnp.tril(jnp.ones((S, S), bool))
    scores = jnp.where(mask, scores, -jnp.inf)
    p = jax.nn.softmax(scores, axis=-1)
    o = jnp.einsum("bhqk,bhkd->bhqd", p, v).transpose(0, 2, 1, 3).reshape(B, S, D)
    h2 = h1 + o @ wo
    h3 = _rms(h2, EPS)
    ff = (jax.nn.silu(h3 @ w1 + b1) * (h3 @ w3 + b3)) @ w2 + b2
    return h2 + ff


# --------------------------------- main ---------------------------------------
if __name__ == "__main__":
    key = jax.random.PRNGKey(0)
    ks = jax.random.split(key, 12)

    def init(k, shape, scale=0.05):
        return jax.random.normal(k, shape, dtype=jnp.float32) * scale

    wq = init(ks[0], (D_MODEL, D_MODEL))
    wk = init(ks[1], (D_MODEL, D_MODEL))
    wv = init(ks[2], (D_MODEL, D_MODEL))
    wo = init(ks[3], (D_MODEL, D_MODEL))
    w1 = init(ks[4], (D_MODEL, INTER))
    b1 = init(ks[5], (1, INTER))
    w2 = init(ks[6], (INTER, D_MODEL))
    b2 = init(ks[7], (1, D_MODEL))
    w3 = init(ks[8], (D_MODEL, INTER))
    b3 = init(ks[9], (1, INTER))

    x = jax.random.normal(ks[10], (BATCH, SEQ, D_MODEL), dtype=jnp.float32)

    raw_params = (wq, wk, wv, wo, w1, b1, w2, b2, w3, b3)
    fused_params = prepare_params(*raw_params)

    out = transformer_block_tp(x, fused_params)
    out = jax.block_until_ready(out)

    ref = reference(x, *raw_params)
    assert out.shape == (BATCH, SEQ, D_MODEL)
    # tolerance accommodates bf16 MXU operands (reference dots are also
    # bf16-demoted at DEFAULT TPU precision)
    np.testing.assert_allclose(np.asarray(out), np.asarray(ref), atol=2e-3, rtol=2e-3)

    print("KERNEL_OK")
</pallas_src>

<mosaic_0001>
module attributes {stable_mosaic.version = 11 : i64} {
  func.func @transformer_block_kernel(%arg0: i32, %arg1: memref<16x32xf32, #tpu.memory_space<vmem>>, %arg2: memref<16x16xf32, #tpu.memory_space<vmem>>, %arg3: memref<32x96xbf16, #tpu.memory_space<vmem>>, %arg4: memref<32x32xbf16, #tpu.memory_space<vmem>>, %arg5: memref<32x256xbf16, #tpu.memory_space<vmem>>, %arg6: memref<1x256xf32, #tpu.memory_space<vmem>>, %arg7: memref<128x32xbf16, #tpu.memory_space<vmem>>, %arg8: memref<1x32xf32, #tpu.memory_space<vmem>>, %arg9: memref<16x32xf32, #tpu.memory_space<vmem>>) attributes {dimension_semantics = [#tpu.dimension_semantics<arbitrary>], iteration_bounds = array<i64: 1>, scalar_prefetch = 0 : i64, scratch_operands = 0 : i64, tpu.core_type = #tpu.core_type<tc>, window_params = [{pipeline_mode = #tpu.pipeline_mode<synchronous>, transform_indices = @transform_0, window_bounds = array<i64: 16, 32>}, {pipeline_mode = #tpu.pipeline_mode<synchronous>, transform_indices = @transform_1, window_bounds = array<i64: 16, 16>}, {pipeline_mode = #tpu.pipeline_mode<synchronous>, transform_indices = @transform_2, window_bounds = array<i64: 32, 96>}, {pipeline_mode = #tpu.pipeline_mode<synchronous>, transform_indices = @transform_3, window_bounds = array<i64: 32, 32>}, {pipeline_mode = #tpu.pipeline_mode<synchronous>, transform_indices = @transform_4, window_bounds = array<i64: 32, 256>}, {pipeline_mode = #tpu.pipeline_mode<synchronous>, transform_indices = @transform_5, window_bounds = array<i64: 1, 256>}, {pipeline_mode = #tpu.pipeline_mode<synchronous>, transform_indices = @transform_6, window_bounds = array<i64: 128, 32>}, {pipeline_mode = #tpu.pipeline_mode<synchronous>, transform_indices = @transform_7, window_bounds = array<i64: 1, 32>}, {pipeline_mode = #tpu.pipeline_mode<synchronous>, transform_indices = @transform_8, window_bounds = array<i64: 16, 32>}]} {
    %c0 = arith.constant 0 : index
    %c0_0 = arith.constant 0 : index
    %0 = vector.load %arg1[%c0, %c0_0] : memref<16x32xf32, #tpu.memory_space<vmem>>, vector<16x32xf32>
    %c0_1 = arith.constant 0 : index
    %c0_2 = arith.constant 0 : index
    %1 = vector.load %arg2[%c0_1, %c0_2] : memref<16x16xf32, #tpu.memory_space<vmem>>, vector<16x16xf32>
    %2 = arith.mulf %0, %0 : vector<16x32xf32>
    %cst = arith.constant dense<0.000000e+00> : vector<16xf32>
    %3 = vector.multi_reduction <add>, %2, %cst [1] : vector<16x32xf32> to vector<16xf32>
    %4 = vector.shape_cast %3 : vector<16xf32> to vector<16x1xf32>
    %cst_3 = arith.constant 3.200000e+01 : f32
    %5 = vector.broadcast %cst_3 : f32 to vector<16x1xf32>
    %6 = arith.divf %4, %5 : vector<16x1xf32>
    %cst_4 = arith.constant 9.99999997E-7 : f32
    %7 = vector.broadcast %cst_4 : f32 to vector<16x1xf32>
    %8 = arith.addf %6, %7 : vector<16x1xf32>
    %9 = math.rsqrt %8 : vector<16x1xf32>
    %10 = vector.broadcast %9 : vector<16x1xf32> to vector<16x32xf32>
    %11 = arith.mulf %0, %10 : vector<16x32xf32>
    %12 = arith.truncf %11 : vector<16x32xf32> to vector<16x32xbf16>
    %c0_5 = arith.constant 0 : index
    %c0_6 = arith.constant 0 : index
    %13 = vector.load %arg3[%c0_5, %c0_6] : memref<32x96xbf16, #tpu.memory_space<vmem>>, vector<32x96xbf16>
    %cst_7 = arith.constant dense<0.000000e+00> : vector<16x96xf32>
    %14 = tpu.matmul %12, %13, %cst_7 {dimension_numbers = #tpu.dot_dimension_numbers<[1], [0], [0], [1], [0, 0, 1, 1], [], []>} : vector<16x32xbf16>, vector<32x96xbf16>, vector<16x96xf32> -> vector<16x96xf32>
    %15 = vector.extract_strided_slice %14 {offsets = [0, 0], sizes = [16, 32], strides = [1, 1]} : vector<16x96xf32> to vector<16x32xf32>
    %16 = arith.truncf %15 : vector<16x32xf32> to vector<16x32xbf16>
    %17 = vector.extract_strided_slice %14 {offsets = [0, 32], sizes = [16, 32], strides = [1, 1]} : vector<16x96xf32> to vector<16x32xf32>
    %18 = arith.truncf %17 : vector<16x32xf32> to vector<16x32xbf16>
    %19 = vector.extract_strided_slice %14 {offsets = [0, 64], sizes = [16, 32], strides = [1, 1]} : vector<16x96xf32> to vector<16x32xf32>
    %20 = arith.truncf %19 : vector<16x32xf32> to vector<16x32xbf16>
    %21 = vector.extract_strided_slice %16 {offsets = [0, 0], sizes = [16, 8], strides = [1, 1]} : vector<16x32xbf16> to vector<16x8xbf16>
    %22 = vector.extract_strided_slice %18 {offsets = [0, 0], sizes = [16, 8], strides = [1, 1]} : vector<16x32xbf16> to vector<16x8xbf16>
    %23 = vector.extract_strided_slice %20 {offsets = [0, 0], sizes = [16, 8], strides = [1, 1]} : vector<16x32xbf16> to vector<16x8xbf16>
    %cst_8 = arith.constant dense<0.000000e+00> : vector<16x16xf32>
    %24 = tpu.matmul %21, %22, %cst_8 {dimension_numbers = #tpu.dot_dimension_numbers<[1], [1], [0], [0], [0, 0, 1, 0], [], []>} : vector<16x8xbf16>, vector<16x8xbf16>, vector<16x16xf32> -> vector<16x16xf32>
    %25 = arith.addf %24, %1 : vector<16x16xf32>
    %cst_9 = arith.constant dense<0xFF800000> : vector<16xf32>
    %26 = vector.multi_reduction <maximumf>, %25, %cst_9 [1] : vector<16x16xf32> to vector<16xf32>
    %27 = vector.shape_cast %26 : vector<16xf32> to vector<16x1xf32>
    %28 = vector.broadcast %27 : vector<16x1xf32> to vector<16x16xf32>
    %29 = arith.subf %25, %28 : vector<16x16xf32>
    %30 = math.exp %29 : vector<16x16xf32>
    %cst_10 = arith.constant dense<0.000000e+00> : vector<16xf32>
    %31 = vector.multi_reduction <add>, %30, %cst_10 [1] : vector<16x16xf32> to vector<16xf32>
    %32 = vector.shape_cast %31 : vector<16xf32> to vector<16x1xf32>
    %33 = vector.broadcast %32 : vector<16x1xf32> to vector<16x16xf32>
    %34 = arith.divf %30, %33 : vector<16x16xf32>
    %35 = arith.truncf %34 : vector<16x16xf32> to vector<16x16xbf16>
    %cst_11 = arith.constant dense<0.000000e+00> : vector<16x8xf32>
    %36 = tpu.matmul %35, %23, %cst_11 {dimension_numbers = #tpu.dot_dimension_numbers<[1], [0], [0], [1], [0, 0, 1, 1], [], []>} : vector<16x16xbf16>, vector<16x8xbf16>, vector<16x8xf32> -> vector<16x8xf32>
    %37 = vector.extract_strided_slice %16 {offsets = [0, 8], sizes = [16, 8], strides = [1, 1]} : vector<16x32xbf16> to vector<16x8xbf16>
    %38 = vector.extract_strided_slice %18 {offsets = [0, 8], sizes = [16, 8], strides = [1, 1]} : vector<16x32xbf16> to vector<16x8xbf16>
    %39 = vector.extract_strided_slice %20 {offsets = [0, 8], sizes = [16, 8], strides = [1, 1]} : vector<16x32xbf16> to vector<16x8xbf16>
    %cst_12 = arith.constant dense<0.000000e+00> : vector<16x16xf32>
    %40 = tpu.matmul %37, %38, %cst_12 {dimension_numbers = #tpu.dot_dimension_numbers<[1], [1], [0], [0], [0, 0, 1, 0], [], []>} : vector<16x8xbf16>, vector<16x8xbf16>, vector<16x16xf32> -> vector<16x16xf32>
    %41 = arith.addf %40, %1 : vector<16x16xf32>
    %cst_13 = arith.constant dense<0xFF800000> : vector<16xf32>
    %42 = vector.multi_reduction <maximumf>, %41, %cst_13 [1] : vector<16x16xf32> to vector<16xf32>
    %43 = vector.shape_cast %42 : vector<16xf32> to vector<16x1xf32>
    %44 = vector.broadcast %43 : vector<16x1xf32> to vector<16x16xf32>
    %45 = arith.subf %41, %44 : vector<16x16xf32>
    %46 = math.exp %45 : vector<16x16xf32>
    %cst_14 = arith.constant dense<0.000000e+00> : vector<16xf32>
    %47 = vector.multi_reduction <add>, %46, %cst_14 [1] : vector<16x16xf32> to vector<16xf32>
    %48 = vector.shape_cast %47 : vector<16xf32> to vector<16x1xf32>
    %49 = vector.broadcast %48 : vector<16x1xf32> to vector<16x16xf32>
    %50 = arith.divf %46, %49 : vector<16x16xf32>
    %51 = arith.truncf %50 : vector<16x16xf32> to vector<16x16xbf16>
    %cst_15 = arith.constant dense<0.000000e+00> : vector<16x8xf32>
    %52 = tpu.matmul %51, %39, %cst_15 {dimension_numbers = #tpu.dot_dimension_numbers<[1], [0], [0], [1], [0, 0, 1, 1], [], []>} : vector<16x16xbf16>, vector<16x8xbf16>, vector<16x8xf32> -> vector<16x8xf32>
    %53 = vector.extract_strided_slice %16 {offsets = [0, 16], sizes = [16, 8], strides = [1, 1]} : vector<16x32xbf16> to vector<16x8xbf16>
    %54 = vector.extract_strided_slice %18 {offsets = [0, 16], sizes = [16, 8], strides = [1, 1]} : vector<16x32xbf16> to vector<16x8xbf16>
    %55 = vector.extract_strided_slice %20 {offsets = [0, 16], sizes = [16, 8], strides = [1, 1]} : vector<16x32xbf16> to vector<16x8xbf16>
    %cst_16 = arith.constant dense<0.000000e+00> : vector<16x16xf32>
    %56 = tpu.matmul %53, %54, %cst_16 {dimension_numbers = #tpu.dot_dimension_numbers<[1], [1], [0], [0], [0, 0, 1, 0], [], []>} : vector<16x8xbf16>, vector<16x8xbf16>, vector<16x16xf32> -> vector<16x16xf32>
    %57 = arith.addf %56, %1 : vector<16x16xf32>
    %cst_17 = arith.constant dense<0xFF800000> : vector<16xf32>
    %58 = vector.multi_reduction <maximumf>, %57, %cst_17 [1] : vector<16x16xf32> to vector<16xf32>
    %59 = vector.shape_cast %58 : vector<16xf32> to vector<16x1xf32>
    %60 = vector.broadcast %59 : vector<16x1xf32> to vector<16x16xf32>
    %61 = arith.subf %57, %60 : vector<16x16xf32>
    %62 = math.exp %61 : vector<16x16xf32>
    %cst_18 = arith.constant dense<0.000000e+00> : vector<16xf32>
    %63 = vector.multi_reduction <add>, %62, %cst_18 [1] : vector<16x16xf32> to vector<16xf32>
    %64 = vector.shape_cast %63 : vector<16xf32> to vector<16x1xf32>
    %65 = vector.broadcast %64 : vector<16x1xf32> to vector<16x16xf32>
    %66 = arith.divf %62, %65 : vector<16x16xf32>
    %67 = arith.truncf %66 : vector<16x16xf32> to vector<16x16xbf16>
    %cst_19 = arith.constant dense<0.000000e+00> : vector<16x8xf32>
    %68 = tpu.matmul %67, %55, %cst_19 {dimension_numbers = #tpu.dot_dimension_numbers<[1], [0], [0], [1], [0, 0, 1, 1], [], []>} : vector<16x16xbf16>, vector<16x8xbf16>, vector<16x8xf32> -> vector<16x8xf32>
    %69 = vector.extract_strided_slice %16 {offsets = [0, 24], sizes = [16, 8], strides = [1, 1]} : vector<16x32xbf16> to vector<16x8xbf16>
    %70 = vector.extract_strided_slice %18 {offsets = [0, 24], sizes = [16, 8], strides = [1, 1]} : vector<16x32xbf16> to vector<16x8xbf16>
    %71 = vector.extract_strided_slice %20 {offsets = [0, 24], sizes = [16, 8], strides = [1, 1]} : vector<16x32xbf16> to vector<16x8xbf16>
    %cst_20 = arith.constant dense<0.000000e+00> : vector<16x16xf32>
    %72 = tpu.matmul %69, %70, %cst_20 {dimension_numbers = #tpu.dot_dimension_numbers<[1], [1], [0], [0], [0, 0, 1, 0], [], []>} : vector<16x8xbf16>, vector<16x8xbf16>, vector<16x16xf32> -> vector<16x16xf32>
    %73 = arith.addf %72, %1 : vector<16x16xf32>
    %cst_21 = arith.constant dense<0xFF800000> : vector<16xf32>
    %74 = vector.multi_reduction <maximumf>, %73, %cst_21 [1] : vector<16x16xf32> to vector<16xf32>
    %75 = vector.shape_cast %74 : vector<16xf32> to vector<16x1xf32>
    %76 = vector.broadcast %75 : vector<16x1xf32> to vector<16x16xf32>
    %77 = arith.subf %73, %76 : vector<16x16xf32>
    %78 = math.exp %77 : vector<16x16xf32>
    %cst_22 = arith.constant dense<0.000000e+00> : vector<16xf32>
    %79 = vector.multi_reduction <add>, %78, %cst_22 [1] : vector<16x16xf32> to vector<16xf32>
    %80 = vector.shape_cast %79 : vector<16xf32> to vector<16x1xf32>
    %81 = vector.broadcast %80 : vector<16x1xf32> to vector<16x16xf32>
    %82 = arith.divf %78, %81 : vector<16x16xf32>
    %83 = arith.truncf %82 : vector<16x16xf32> to vector<16x16xbf16>
    %cst_23 = arith.constant dense<0.000000e+00> : vector<16x8xf32>
    %84 = tpu.matmul %83, %71, %cst_23 {dimension_numbers = #tpu.dot_dimension_numbers<[1], [0], [0], [1], [0, 0, 1, 1], [], []>} : vector<16x16xbf16>, vector<16x8xbf16>, vector<16x8xf32> -> vector<16x8xf32>
    %85 = tpu.concatenate %36, %52, %68, %84 in 1 : vector<16x8xf32>, vector<16x8xf32>, vector<16x8xf32>, vector<16x8xf32> -> vector<16x32xf32>
    %86 = arith.truncf %85 : vector<16x32xf32> to vector<16x32xbf16>
    %c0_24 = arith.constant 0 : index
    %c0_25 = arith.constant 0 : index
    %87 = vector.load %arg4[%c0_24, %c0_25] : memref<32x32xbf16, #tpu.memory_space<vmem>>, vector<32x32xbf16>
    %cst_26 = arith.constant dense<0.000000e+00> : vector<16x32xf32>
    %88 = tpu.matmul %86, %87, %cst_26 {dimension_numbers = #tpu.dot_dimension_numbers<[1], [0], [0], [1], [0, 0, 1, 1], [], []>} : vector<16x32xbf16>, vector<32x32xbf16>, vector<16x32xf32> -> vector<16x32xf32>
    %89 = arith.addf %11, %88 : vector<16x32xf32>
    %90 = arith.mulf %89, %89 : vector<16x32xf32>
    %cst_27 = arith.constant dense<0.000000e+00> : vector<16xf32>
    %91 = vector.multi_reduction <add>, %90, %cst_27 [1] : vector<16x32xf32> to vector<16xf32>
    %92 = vector.shape_cast %91 : vector<16xf32> to vector<16x1xf32>
    %cst_28 = arith.constant 3.200000e+01 : f32
    %93 = vector.broadcast %cst_28 : f32 to vector<16x1xf32>
    %94 = arith.divf %92, %93 : vector<16x1xf32>
    %cst_29 = arith.constant 9.99999997E-7 : f32
    %95 = vector.broadcast %cst_29 : f32 to vector<16x1xf32>
    %96 = arith.addf %94, %95 : vector<16x1xf32>
    %97 = math.rsqrt %96 : vector<16x1xf32>
    %98 = vector.broadcast %97 : vector<16x1xf32> to vector<16x32xf32>
    %99 = arith.mulf %89, %98 : vector<16x32xf32>
    %100 = arith.truncf %99 : vector<16x32xf32> to vector<16x32xbf16>
    %c0_30 = arith.constant 0 : index
    %c0_31 = arith.constant 0 : index
    %101 = vector.load %arg5[%c0_30, %c0_31] : memref<32x256xbf16, #tpu.memory_space<vmem>>, vector<32x256xbf16>
    %cst_32 = arith.constant dense<0.000000e+00> : vector<16x256xf32>
    %102 = tpu.matmul %100, %101, %cst_32 {dimension_numbers = #tpu.dot_dimension_numbers<[1], [0], [0], [1], [0, 0, 1, 1], [], []>} : vector<16x32xbf16>, vector<32x256xbf16>, vector<16x256xf32> -> vector<16x256xf32>
    %c0_33 = arith.constant 0 : index
    %c0_34 = arith.constant 0 : index
    %103 = vector.load %arg6[%c0_33, %c0_34] : memref<1x256xf32, #tpu.memory_space<vmem>>, vector<1x256xf32>
    %104 = vector.broadcast %103 : vector<1x256xf32> to vector<16x256xf32>
    %105 = arith.addf %102, %104 : vector<16x256xf32>
    %106 = vector.extract_strided_slice %105 {offsets = [0, 0], sizes = [16, 128], strides = [1, 1]} : vector<16x256xf32> to vector<16x128xf32>
    %107 = vector.extract_strided_slice %105 {offsets = [0, 128], sizes = [16, 128], strides = [1, 1]} : vector<16x256xf32> to vector<16x128xf32>
    %cst_35 = arith.constant 0.000000e+00 : f32
    %108 = vector.broadcast %cst_35 : f32 to vector<16x128xf32>
    %109 = arith.subf %108, %106 : vector<16x128xf32>
    %110 = math.exp %109 : vector<16x128xf32>
    %cst_36 = arith.constant 1.000000e+00 : f32
    %111 = vector.broadcast %cst_36 : f32 to vector<16x128xf32>
    %112 = arith.addf %111, %110 : vector<16x128xf32>
    %cst_37 = arith.constant 1.000000e+00 : f32
    %113 = vector.broadcast %cst_37 : f32 to vector<16x128xf32>
    %114 = arith.divf %113, %112 : vector<16x128xf32>
    %115 = arith.mulf %106, %114 : vector<16x128xf32>
    %116 = arith.mulf %115, %107 : vector<16x128xf32>
    %117 = arith.truncf %116 : vector<16x128xf32> to vector<16x128xbf16>
    %c0_38 = arith.constant 0 : index
    %c0_39 = arith.constant 0 : index
    %118 = vector.load %arg7[%c0_38, %c0_39] : memref<128x32xbf16, #tpu.memory_space<vmem>>, vector<128x32xbf16>
    %cst_40 = arith.constant dense<0.000000e+00> : vector<16x32xf32>
    %119 = tpu.matmul %117, %118, %cst_40 {dimension_numbers = #tpu.dot_dimension_numbers<[1], [0], [0], [1], [0, 0, 1, 1], [], []>} : vector<16x128xbf16>, vector<128x32xbf16>, vector<16x32xf32> -> vector<16x32xf32>
    %c0_41 = arith.constant 0 : index
    %c0_42 = arith.constant 0 : index
    %120 = vector.load %arg8[%c0_41, %c0_42] : memref<1x32xf32, #tpu.memory_space<vmem>>, vector<1x32xf32>
    %121 = vector.broadcast %120 : vector<1x32xf32> to vector<16x32xf32>
    %122 = arith.addf %119, %121 : vector<16x32xf32>
    %123 = arith.addf %89, %122 : vector<16x32xf32>
    %c0_43 = arith.constant 0 : index
    %c0_44 = arith.constant 0 : index
    %124 = vector.load %arg9[%c0_43, %c0_44] : memref<16x32xf32, #tpu.memory_space<vmem>>, vector<16x32xf32>
    tpu.vector_store %arg9[%c0_43, %c0_44], %123 {strides = array<i32>} : memref<16x32xf32, #tpu.memory_space<vmem>>, vector<16x32xf32>,
    return
  }
  func.func @transform_0(%arg0: i32) -> (i32, i32) {
    %c0_i32 = arith.constant 0 : i32
    %c0_i32_0 = arith.constant 0 : i32
    %c0_i32_1 = arith.constant 0 : i32
    return %c0_i32, %c0_i32_0 : i32, i32
  }
  func.func @transform_1(%arg0: i32) -> (i32, i32) {
    %c0_i32 = arith.constant 0 : i32
    %c0_i32_0 = arith.constant 0 : i32
    %c0_i32_1 = arith.constant 0 : i32
    return %c0_i32, %c0_i32_0 : i32, i32
  }
  func.func @transform_2(%arg0: i32) -> (i32, i32) {
    %c0_i32 = arith.constant 0 : i32
    %c0_i32_0 = arith.constant 0 : i32
    %c0_i32_1 = arith.constant 0 : i32
    return %c0_i32, %c0_i32_0 : i32, i32
  }
  func.func @transform_3(%arg0: i32) -> (i32, i32) {
    %c0_i32 = arith.constant 0 : i32
    %c0_i32_0 = arith.constant 0 : i32
    %c0_i32_1 = arith.constant 0 : i32
    return %c0_i32, %c0_i32_0 : i32, i32
  }
  func.func @transform_4(%arg0: i32) -> (i32, i32) {
    %c0_i32 = arith.constant 0 : i32
    %c0_i32_0 = arith.constant 0 : i32
    %c0_i32_1 = arith.constant 0 : i32
    return %c0_i32, %c0_i32_0 : i32, i32
  }
  func.func @transform_5(%arg0: i32) -> (i32, i32) {
    %c0_i32 = arith.constant 0 : i32
    %c0_i32_0 = arith.constant 0 : i32
    %c0_i32_1 = arith.constant 0 : i32
    return %c0_i32, %c0_i32_0 : i32, i32
  }
  func.func @transform_6(%arg0: i32) -> (i32, i32) {
    %c0_i32 = arith.constant 0 : i32
    %c0_i32_0 = arith.constant 0 : i32
    %c0_i32_1 = arith.constant 0 : i32
    return %c0_i32, %c0_i32_0 : i32, i32
  }
  func.func @transform_7(%arg0: i32) -> (i32, i32) {
    %c0_i32 = arith.constant 0 : i32
    %c0_i32_0 = arith.constant 0 : i32
    %c0_i32_1 = arith.constant 0 : i32
    return %c0_i32, %c0_i32_0 : i32, i32
  }
  func.func @transform_8(%arg0: i32) -> (i32, i32) {
    %c0_i32 = arith.constant 0 : i32
    %c0_i32_0 = arith.constant 0 : i32
    %c0_i32_1 = arith.constant 0 : i32
    return %c0_i32, %c0_i32_0 : i32, i32
  }
}

</mosaic_0001>

<bundles_post_ra>
// kernel: tpu_custom_call.1
= control target key start
LH: loop header
LB: loop body
LE: loop exit
PB: predicated region body
PF: predicated region fallthrough
CT: control target
= control target key end

     0   :  { %13 = vsyncpa [#allocation3], 0  ;;  %s1522_s0 = inlined_call_operand.vmem [shape: f32[16,32], index: 0, kind: input, shape index: {}]   ;;  %s1523_s1 = inlined_call_operand.vmem [shape: f32[16,16], index: 1, kind: input, shape index: {}]   ;;  %s1524_s2 = inlined_call_operand.vmem [shape: bf16[32,96], index: 2, kind: input, shape index: {}]   ;;  %s1525_s3 = inlined_call_operand.hbm [shape: bf16[32,32], index: 3, kind: input, shape index: {}]   ;;  %s1526_s4 = inlined_call_operand.vmem [shape: bf16[32,256], index: 4, kind: input, shape index: {}]   ;;  %s1527_s5 = inlined_call_operand.vmem [shape: f32[1,256], index: 5, kind: input, shape index: {}]   ;;  %s1528_s6 = inlined_call_operand.vmem [shape: bf16[128,32], index: 6, kind: input, shape index: {}]   ;;  %s1529_s7 = inlined_call_operand.vmem [shape: f32[1,32], index: 7, kind: input, shape index: {}]   ;;  %s1530_s8 = inlined_call_operand.hbm [shape: f32[16,32], index: 8, kind: output, shape index: {}]  }
   0x1   :  { %14 = vsyncpa [#allocation4], 0  ;;  %s1250_s27 = smov [#allocation2]   ;;  %s1202_s9 = scalar_lea.hbm %s1525_s3, 256 }
   0x2   :  { %s26_s28 = sshll.u32 %s1250_s27, 4  ;;  %p1203_p0 = scmp.ne.s32.totalorder %s1525_s3, %s1202_s9  ;;  %s27_s28 = int_to_ptr.vmem [resolvable:$true] %s26_s28 }
   0x3   :  { %p1206_p1 = scmp.lt.u32.totalorder %s1202_s9, %s1525_s3 }
   0x5   :  { %p1208_p2 = pnand %p1206_p1, %p1203_p0 }
   0x7   :  { %1211 = shalt.err (!%p1208_p2)
}
   0x8   :  { %s1212_s14 = scalar_lea.vmem %s27_s28, 256  ;;  %p1217_p4 = scmp.lt.s32.totalorder %s27_s28, %s27_s28 }
   0x9   :  { %p1213_p3 = scmp.ne.s32.totalorder %s27_s28, %s1212_s14  ;;  %p1218_p5 = scmp.lt.s32.totalorder %s1212_s14, %s1212_s14 }
   0xb   :  { %p1219_p6 = por %p1218_p5, %p1217_p4 }
   0xd   :  { %p1220_p7 = pnand %p1219_p6, %p1213_p3 }
   0xf   :  { %1223 = shalt.err (!%p1220_p7)
}
  0x10   :  { %s1251_s15 = smov 64   ;;  %s1252_s16 = smov 4  }
  0x11   :  { %32 = dma.hbm_to_vmem [thread:$0]  %s1525_s3, 256, %s27_s28, [#allocation3], %s1251_s15, %s1251_s15, %s1252_s16  }
  0x12   :  { %1246 = dma.done.wait [#allocation3], 256  }
  0x13   :  { %1247 = vsyncadd [#allocation3], 4294967040  ;;  %v45_v0 = vld [vmem:[%s1522_s0] sm:$0xff]  ;;  %vm51_vm0 = vcmask 261120   ;;  %v46_v1 = vld [vmem:[%s1522_s0 + $0x8] sm:$0xff]  ;;  %v1253_v7 = vmov 0.0  }
  0x14   :  { %v49_v2 = vmul.f32 %v45_v0, %v45_v0  ;;  %v50_v3 = vmul.f32 %v46_v1, %v46_v1  ;;  %v1136_v6 = vld [vmem:[%s1524_s2] sm:$0xff]   ;;  %1016 = vmatprep.subr.bf16.mxu0 %v1253_v7  ;;  %vm1254_vm1 = vmmov 0   ;;  %v1137_v8 = vld [vmem:[%s1524_s2 + $0x8] sm:$0xff]   ;;  %1036 = vmatprep.subr.bf16.mxu1 %v1253_v7  ;;  %s1255_s2 = smov 120   ;;  %s1256_s25 = smov 96   ;;  %vm132_vm2 = vcmask 64512  }
  0x15   :  { %1020 = vmatprep.mubr.msk.bf16.mxu0 %vm1254_vm1, %v1253_v7  ;;  %1017 = vmatpush3.bf16.msra.mxu0 %v1136_v6  ;;  %s1257_s26 = smov 88   ;;  %s1258_s27 = smov 80   ;;  %v47_v36 = vld [vmem:[%s1523_s1] sm:$0xff]  ;;  %v48_v38 = vld [vmem:[%s1523_s1 + $0x8] sm:$0xff]  ;;  %vm180_vm3 = vcmask 130048   ;;  %vm642_vm4 = vcmask 195584  }
  0x16   :  { %v52_v4 = vsel %vm51_vm0, %v49_v2, 0.0  ;;  %v55_v5 = vsel %vm51_vm0, %v50_v3, 0.0  ;;  %1018 = vmatprep.subr.bf16.mxu0 %v1253_v7  ;;  %1038 = vmatprep.mubr.msk.bf16.mxu1 %vm1254_vm1, %v1253_v7  ;;  %s1259_s28 = smov 112   ;;  %s1260_s29 = smov 72  }
  0x17   :  { %53 = vadd.xlane.f32.xlu0 %v52_v4  ;;  %s1261_s30 = smov 104   ;;  %s1262_s1 = smov 48  }
  0x18   :  { %s1263_s13 = smov 40   ;;  %s1264_s14 = smov 56  }
  0x19   :  { %1019 = vmatpush3.bf16.msra.mxu0 %v1137_v8  ;;  %s1266_s16 = smov 16   ;;  %s1267_s17 = smov 24  }
  0x1a   :  { %1024 = vmatprep.subr.bf16.mxu0 %v1253_v7  ;;  %s1269_s18 = smov [#allocation5]  }
  0x1b   :  { %56 = vadd.xlane.f32.xlu0 %v55_v5  ;;  %s945_s19 = sshll.u32 %s1269_s18, 4  ;;  %s946_s19 = int_to_ptr.vmem [resolvable:$true] %s945_s19 }
  0x1c   :  { %s1224_s20 = scalar_lea.vmem %s946_s19, 256  ;;  %p1229_p9 = scmp.lt.s32.totalorder %s946_s19, %s946_s19 }
  0x1d   :  { %p1225_p8 = scmp.ne.s32.totalorder %s946_s19, %s1224_s20  ;;  %p1230_p10 = scmp.lt.s32.totalorder %s1224_s20, %s1224_s20 }
  0x1f   :  { %p1231_p11 = por %p1230_p10, %p1229_p9 }
  0x21   :  { %p1232_p12 = pnand %p1231_p11, %p1225_p8 }
  0xa4   :  { %v54_v9 = vpop.xlane.xlu0 %53 }
  0xa5   :  { %v59_v10 = vmul.f32 0.03125, %v54_v9 }
  0xa7   :  { %v61_v11 = vadd.f32 1e-06, %v59_v10 }
  0xa8   :  { %v57_v12 = vpop.xlane.xlu0 %56 }
  0xa9   :  { %v60_v13 = vmul.f32 0.03125, %v57_v12  ;;  %1154 = vrsqrt.f32 %v61_v11 }
  0xab   :  { %v62_v14 = vadd.f32 1e-06, %v60_v13 }
  0xad   :  { %1156 = vrsqrt.f32 %v62_v14 }
  0xb3   :  { %v1155_v15 = vpop.eup %1154 }
  0xb4   :  { %v1352_v17 = vmul.f32 %v1155_v15, %v45_v0 }
  0xb7   :  { %v1157_v16 = vpop.eup %1156 }
  0xb8   :  { %v1354_v18 = vmul.f32 %v1157_v16, %v46_v1 }
  0xba   :  { %v67_v19 = vpack.c.bf16 %v1354_v18, %v1352_v17 }
  0xbc   :  { %1021 = vmatmul.mubr.msk.bf16.vlgmr.msra.gmra.mrb[0].mxu0 %vm51_vm0, %v67_v19 }
  0xbd   :  { %1026 = vmatprep.mubr.msk.bf16.mxu0 %vm1254_vm1, %v1253_v7 }
 0x18f   :  { %v121_v20 = vpop.f32.mrb[0].mxu0 }
 0x190   :  { %v1022_v21 = vpop.f32.mrb[1].mxu0 }
 0x191   :  { %v124_v22 = vpop.f32.mrb[2].mxu0 }
 0x192   :  { %v1361_v23 = vpack.c.bf16 %v124_v22, %v121_v20  ;;  %v1023_v24 = vpop.f32.mrb[3].mxu0 }
 0x194   :  { %251 = vrot.lane.b32.xlu0 %v1361_v23, %s1255_s2  ;;  %130 = vrot.lane.b32.xlu1 %v1361_v23, %s1256_s25 }
 0x198   :  { %253 = vrot.lane.b32.xlu1 %v1361_v23, %s1257_s26 }
 0x19c   :  { %374 = vrot.lane.b32.xlu1 %v1361_v23, %s1258_s27 }
 0x1a0   :  { %372 = vrot.lane.b32.xlu1 %v1361_v23, %s1259_s28 }
 0x1a4   :  { %495 = vrot.lane.b32.xlu1 %v1361_v23, %s1260_s29 }
 0x1a8   :  { %493 = vrot.lane.b32.xlu1 %v1361_v23, %s1261_s30 }
 0x206   :  { %v131_v25 = vpop.permute.xlu1 %130  ;;  %v252_v30 = vpop.permute.xlu0 %251 }
 0x207   :  { %v137_v26 = vsel %vm132_vm2, %v131_v25, 0 }
 0x208   :  { %1025 = vmatpush3.bf16.xpose.msra.mxu0 %v137_v26 }
 0x209   :  { %1030 = vmatprep.subr.bf16.mxu0 %v1253_v7 }
 0x20a   :  { %v254_v27 = vpop.permute.xlu1 %253 }
 0x20b   :  { %v259_v28 = vsel %vm132_vm2, %v254_v27, 0 }
 0x20c   :  { %1037 = vmatpush3.bf16.xpose.msra.mxu1 %v259_v28 }
 0x20d   :  { %1048 = vmatprep.subr.bf16.mxu1 %v1253_v7 }
 0x20e   :  { %v375_v29 = vpop.permute.xlu1 %374 }
 0x20f   :  { %1027 = vmatmul.mubr.msk.bf16.vlgmr.msra.gmra.mrb[4].mxu0 %vm132_vm2, %v1361_v23  ;;  %v380_v32 = vsel %vm132_vm2, %v375_v29, 0 }
 0x210   :  { %1032 = vmatprep.mubr.msk.bf16.mxu0 %vm1254_vm1, %v1253_v7 }
 0x212   :  { %v373_v31 = vpop.permute.xlu1 %372 }
 0x213   :  { %1039 = vmatmul.mubr.msk.bf16.vlgmr.msra.gmra.mrb[0].mxu1 %vm132_vm2, %v252_v30 }
 0x214   :  { %1049 = vmatpush3.bf16.xpose.msra.mxu1 %v380_v32  ;;  %1050 = vmatprep.mubr.msk.bf16.mxu1 %vm1254_vm1, %v1253_v7 }
 0x215   :  { %1060 = vmatprep.subr.bf16.mxu1 %v1253_v7 }
 0x216   :  { %v496_v33 = vpop.permute.xlu1 %495 }
 0x217   :  { %v501_v34 = vsel %vm132_vm2, %v496_v33, 0 }
 0x21a   :  { %v494_v35 = vpop.permute.xlu1 %493 }
 0x21b   :  { %1051 = vmatmul.mubr.msk.bf16.vlgmr.msra.gmra.mrb[4].mxu1 %vm132_vm2, %v373_v31 }
 0x21c   :  { %1061 = vmatpush3.bf16.xpose.msra.mxu1 %v501_v34  ;;  %1062 = vmatprep.mubr.msk.bf16.mxu1 %vm1254_vm1, %v1253_v7 }
 0x21d   :  { %1072 = vmatprep.subr.bf16.mxu1 %v1253_v7 }
 0x223   :  { %1063 = vmatmul.mubr.msk.bf16.vlgmr.msra.gmra.mrb[8].mxu1 %vm132_vm2, %v494_v35 }
 0x224   :  { %1076 = vmatprep.mubr.msk.bf16.mxu1 %vm1254_vm1, %v1253_v7 }
 0x2e2   :  { %v173_v37 = vpop.f32.mrb[4].mxu0 }
 0x2e3   :  { %v174_v39 = vadd.f32 %v173_v37, %v47_v36  ;;  %v1028_v40 = vpop.f32.mrb[5].mxu0 }
 0x2e4   :  { %v176_v41 = vpop.f32.mrb[6].mxu0 }
 0x2e5   :  { %v177_v42 = vadd.f32 %v176_v41, %v48_v38  ;;  %v1029_v43 = vpop.f32.mrb[7].mxu0  ;;  %v181_v44 = vsel %vm180_vm3, %v174_v39, -inf }
 0x2e6   :  { %v295_v45 = vpop.f32.mrb[0].mxu1  ;;  %182 = vmax.xlane.f32.xlu1 %v181_v44 }
 0x2e7   :  { %v296_v46 = vadd.f32 %v295_v45, %v47_v36  ;;  %v1040_v47 = vpop.f32.mrb[1].mxu1  ;;  %v184_v48 = vsel %vm180_vm3, %v177_v42, -inf }
 0x2e8   :  { %v298_v49 = vpop.f32.mrb[2].mxu1  ;;  %185 = vmax.xlane.f32.xlu0 %v184_v48 }
 0x2e9   :  { %v299_v50 = vadd.f32 %v298_v49, %v48_v38  ;;  %v1041_v51 = vpop.f32.mrb[3].mxu1  ;;  %v302_v52 = vsel %vm180_vm3, %v296_v46, -inf }
 0x2ea   :  { %303 = vmax.xlane.f32.xlu1 %v302_v52 }
 0x2eb   :  { %v305_v53 = vsel %vm180_vm3, %v299_v50, -inf }
 0x2ec   :  { %306 = vmax.xlane.f32.xlu0 %v305_v53 }
 0x2ee   :  { %v416_v54 = vpop.f32.mrb[4].mxu1 }
 0x2ef   :  { %v417_v55 = vadd.f32 %v416_v54, %v47_v36  ;;  %v1052_v56 = vpop.f32.mrb[5].mxu1 }
 0x2f0   :  { %v419_v57 = vpop.f32.mrb[6].mxu1 }
 0x2f1   :  { %v420_v58 = vadd.f32 %v419_v57, %v48_v38  ;;  %v1053_v59 = vpop.f32.mrb[7].mxu1  ;;  %v423_v60 = vsel %vm180_vm3, %v417_v55, -inf }
 0x2f2   :  { %424 = vmax.xlane.f32.xlu1 %v423_v60 }
 0x2f3   :  { %v426_v61 = vsel %vm180_vm3, %v420_v58, -inf }
 0x2f4   :  { %427 = vmax.xlane.f32.xlu0 %v426_v61 }
 0x2f6   :  { %v537_v62 = vpop.f32.mrb[8].mxu1 }
 0x2f7   :  { %v538_v63 = vadd.f32 %v537_v62, %v47_v36  ;;  %v1064_v0 = vpop.f32.mrb[9].mxu1 }
 0x2f8   :  { %v540_v1 = vpop.f32.mrb[10].mxu1 }
 0x2f9   :  { %v541_v2 = vadd.f32 %v540_v1, %v48_v38  ;;  %v1065_v3 = vpop.f32.mrb[11].mxu1  ;;  %v544_v4 = vsel %vm180_vm3, %v538_v63, -inf }
 0x2fa   :  { %545 = vmax.xlane.f32.xlu1 %v544_v4 }
 0x2fb   :  { %v547_v5 = vsel %vm180_vm3, %v541_v2, -inf }
 0x2fc   :  { %548 = vmax.xlane.f32.xlu0 %v547_v5 }
 0x30b   :  { %204 = vrot.lane.b32.xlu1 %v1361_v23, %s1251_s15  ;;  %s1265_s15 = smov 8  }
 0x373   :  { %v183_v6 = vpop.xlane.xlu1 %182 }
 0x374   :  { %v187_v8 = vsub.f32 %v174_v39, %v183_v6 }
 0x375   :  { %v186_v9 = vpop.xlane.xlu0 %185 }
 0x376   :  { %v189_v10 = vmul.f32 1.442695, %v187_v8  ;;  %v188_v11 = vsub.f32 %v177_v42, %v186_v9 }
 0x377   :  { %v304_v12 = vpop.xlane.xlu1 %303 }
 0x378   :  { %1158 = vpow2.f32 %v189_v10  ;;  %v191_v13 = vmul.f32 1.442695, %v188_v11  ;;  %v308_v14 = vsub.f32 %v296_v46, %v304_v12 }
 0x379   :  { %v307_v15 = vpop.xlane.xlu0 %306 }
 0x37a   :  { %1160 = vpow2.f32 %v191_v13  ;;  %v310_v16 = vmul.f32 1.442695, %v308_v14  ;;  %v309_v19 = vsub.f32 %v299_v50, %v307_v15 }
 0x37c   :  { %1162 = vpow2.f32 %v310_v16  ;;  %v312_v20 = vmul.f32 1.442695, %v309_v19 }
 0x37e   :  { %1164 = vpow2.f32 %v312_v20 }
 0x37f   :  { %v425_v21 = vpop.xlane.xlu1 %424 }
 0x380   :  { %v429_v22 = vsub.f32 %v417_v55, %v425_v21 }
 0x381   :  { %v428_v24 = vpop.xlane.xlu0 %427 }
 0x382   :  { %v1159_v25 = vpop.eup %1158  ;;  %v431_v26 = vmul.f32 1.442695, %v429_v22  ;;  %v430_v27 = vsub.f32 %v420_v58, %v428_v24 }
 0x383   :  { %v193_v28 = vsel %vm180_vm3, %v1159_v25, 0.0 }
 0x384   :  { %v1161_v29 = vpop.eup %1160  ;;  %1166 = vpow2.f32 %v431_v26  ;;  %v433_v30 = vmul.f32 1.442695, %v430_v27  ;;  %194 = vadd.xlane.f32.xlu1 %v193_v28  ;;  %v1138_v28 = vld [vmem:[#allocation2] sm:$0xff]  }
 0x385   :  { %v196_v31 = vsel %vm180_vm3, %v1161_v29, 0.0  ;;  %1073 = vmatpush3.bf16.msra.mxu1 %v1138_v28  ;;  %v1153_v28 = vld [vmem:[%s1528_s6 + $0x38] sm:$0xff]  }
 0x386   :  { %v1163_v32 = vpop.eup %1162  ;;  %1168 = vpow2.f32 %v433_v30  ;;  %197 = vadd.xlane.f32.xlu0 %v196_v31  ;;  %1074 = vmatprep.subr.bf16.mxu1 %v1253_v7 }
 0x387   :  { %v546_v33 = vpop.xlane.xlu1 %545  ;;  %v314_v34 = vsel %vm180_vm3, %v1163_v32, 0.0 }
 0x388   :  { %v1165_v35 = vpop.eup %1164  ;;  %v550_v36 = vsub.f32 %v538_v63, %v546_v33  ;;  %315 = vadd.xlane.f32.xlu1 %v314_v34  ;;  %v1139_v33 = vld [vmem:[#allocation2 + $0x8] sm:$0xff]  }
 0x389   :  { %v549_v37 = vpop.xlane.xlu0 %548  ;;  %v317_v38 = vsel %vm180_vm3, %v1165_v35, 0.0  ;;  %1075 = vmatpush3.bf16.msra.mxu1 %v1139_v33 }
 0x38a   :  { %v552_v39 = vmul.f32 1.442695, %v550_v36  ;;  %v551_v40 = vsub.f32 %v541_v2, %v549_v37  ;;  %318 = vadd.xlane.f32.xlu0 %v317_v38  ;;  %1080 = vmatprep.subr.bf16.mxu1 %v1253_v7 }
 0x38b   :  { %v205_v41 = vpop.permute.xlu1 %204 }
 0x38c   :  { %1170 = vpow2.f32 %v552_v39  ;;  %v554_v42 = vmul.f32 1.442695, %v551_v40  ;;  %1031 = vmatpush3.bf16.msra.mxu0 %v205_v41 }
 0x38d   :  { %1042 = vmatprep.subr.bf16.mxu0 %v1253_v7 }
 0x38e   :  { %v1167_v43 = vpop.eup %1166  ;;  %1172 = vpow2.f32 %v554_v42 }
 0x38f   :  { %v435_v44 = vsel %vm180_vm3, %v1167_v43, 0.0 }
 0x390   :  { %v1169_v45 = vpop.eup %1168  ;;  %436 = vadd.xlane.f32.xlu1 %v435_v44 }
 0x391   :  { %v438_v46 = vsel %vm180_vm3, %v1169_v45, 0.0 }
 0x392   :  { %439 = vadd.xlane.f32.xlu0 %v438_v46 }
 0x396   :  { %v1171_v47 = vpop.eup %1170 }
 0x397   :  { %v556_v48 = vsel %vm180_vm3, %v1171_v47, 0.0 }
 0x398   :  { %v1173_v49 = vpop.eup %1172  ;;  %557 = vadd.xlane.f32.xlu1 %v556_v48 }
 0x399   :  { %v559_v50 = vsel %vm180_vm3, %v1173_v49, 0.0 }
 0x39a   :  { %560 = vadd.xlane.f32.xlu0 %v559_v50 }
 0x3a9   :  { %446 = vrot.lane.b32.xlu1 %v1361_v23, %s1262_s1 }
 0x3ad   :  { %567 = vrot.lane.b32.xlu1 %v1361_v23, %s1263_s13 }
 0x3b0   :  { %325 = vrot.lane.b32.xlu0 %v1361_v23, %s1264_s14 }
 0x411   :  { %v195_v51 = vpop.xlane.xlu1 %194 }
 0x412   :  { %1174 = vrcp.f32 %v195_v51 }
 0x413   :  { %v198_v52 = vpop.xlane.xlu0 %197 }
 0x414   :  { %1176 = vrcp.f32 %v198_v52 }
 0x415   :  { %v316_v54 = vpop.xlane.xlu1 %315 }
 0x417   :  { %v319_v53 = vpop.xlane.xlu0 %318 }
 0x418   :  { %1178 = vrcp.f32 %v319_v53 }
 0x419   :  { %1180 = vrcp.f32 %v316_v54 }
 0x41c   :  { %v1175_v55 = vpop.eup %1174 }
 0x41d   :  { %v200_v57 = vmul.f32 %v1175_v55, %v1159_v25  ;;  %v437_v61 = vpop.xlane.xlu1 %436 }
 0x41e   :  { %v1177_v56 = vpop.eup %1176 }
 0x41f   :  { %v202_v58 = vmul.f32 %v1177_v56, %v1161_v29  ;;  %v440_v59 = vpop.xlane.xlu0 %439 }
 0x420   :  { %1182 = vrcp.f32 %v440_v59 }
 0x421   :  { %v203_v60 = vpack.c.bf16 %v202_v58, %v200_v57  ;;  %1184 = vrcp.f32 %v437_v61 }
 0x422   :  { %v1179_v23 = vpop.eup %1178 }
 0x423   :  { %1033 = vmatmul.mubr.msk.bf16.vlgmr.msra.gmra.mrb[8].mxu0 %vm180_vm3, %v203_v60  ;;  %v1181_v63 = vpop.eup %1180  ;;  %v323_v0 = vmul.f32 %v1179_v23, %v1165_v35 }
 0x424   :  { %1044 = vmatprep.mubr.msk.bf16.mxu0 %vm1254_vm1, %v1253_v7  ;;  %v321_v2 = vmul.f32 %v1181_v63, %v1163_v32 }
 0x425   :  { %v558_v1 = vpop.xlane.xlu1 %557 }
 0x426   :  { %v324_v4 = vpack.c.bf16 %v323_v0, %v321_v2 }
 0x427   :  { %v561_v62 = vpop.xlane.xlu0 %560 }
 0x428   :  { %1186 = vrcp.f32 %v561_v62 }
 0x429   :  { %1188 = vrcp.f32 %v558_v1  ;;  %v447_v6 = vpop.permute.xlu1 %446 }
 0x42a   :  { %v1183_v5 = vpop.eup %1182 }
 0x42b   :  { %v326_v3 = vpop.permute.xlu0 %325  ;;  %v1185_v8 = vpop.eup %1184  ;;  %v444_v9 = vmul.f32 %v1183_v5, %v1169_v45  ;;  %v1268_v5 = vmov 0  }
 0x42c   :  { %1043 = vmatpush3.bf16.msra.mxu0 %v326_v3  ;;  %v442_v10 = vmul.f32 %v1185_v8, %v1167_v43  ;;  %v1145_v3 = vld [vmem:[%s1526_s4 + $0x14] ss:$8 sps:$4 sm:$0xff]  }
 0x42d   :  { %1054 = vmatprep.subr.bf16.mxu0 %v1253_v7  ;;  %v568_v13 = vpop.permute.xlu1 %567 }
 0x42e   :  { %v445_v11 = vpack.c.bf16 %v444_v9, %v442_v10 }
 0x42f   :  { %1045 = vmatmul.mubr.msk.bf16.vlgmr.msra.gmra.mrb[12].mxu0 %vm180_vm3, %v324_v4  ;;  %v1143_v4 = vld [vmem:[%s1526_s4 + $0x10] ss:$8 sps:$4 sm:$0xff]  }
 0x430   :  { %1055 = vmatpush3.bf16.msra.mxu0 %v447_v6  ;;  %1056 = vmatprep.mubr.msk.bf16.mxu0 %vm1254_vm1, %v1253_v7 }
 0x431   :  { %1066 = vmatprep.subr.bf16.mxu0 %v1253_v7 }
 0x432   :  { %v1187_v12 = vpop.eup %1186 }
 0x433   :  { %v1189_v14 = vpop.eup %1188  ;;  %v565_v15 = vmul.f32 %v1187_v12, %v1173_v49 }
 0x434   :  { %v563_v16 = vmul.f32 %v1189_v14, %v1171_v47 }
 0x436   :  { %v566_v19 = vpack.c.bf16 %v565_v15, %v563_v16 }
 0x437   :  { %1057 = vmatmul.mubr.msk.bf16.vlgmr.msra.gmra.mrb[16].mxu0 %vm180_vm3, %v445_v11 }
 0x438   :  { %1067 = vmatpush3.bf16.msra.mxu0 %v568_v13  ;;  %1068 = vmatprep.mubr.msk.bf16.mxu0 %vm1254_vm1, %v1253_v7 }
 0x43f   :  { %1069 = vmatmul.mubr.msk.bf16.vlgmr.msra.gmra.mrb[20].mxu0 %vm180_vm3, %v566_v19 }
 0x440   :  { %796 = vmatprep.mubr.bf16.mxu0 %v1268_v5 }
 0x4f6   :  { %v244_v20 = vpop.f32.mrb[8].mxu0 }
 0x4f7   :  { %v1034_v21 = vpop.f32.mrb[9].mxu0 }
 0x4f8   :  { %v247_v22 = vpop.f32.mrb[10].mxu0  ;;  %v1147_v21 = vld [vmem:[%s1528_s6 + $0x8] sm:$0xff]  }
 0x4f9   :  { %v1035_v24 = vpop.f32.mrb[11].mxu0 }
 0x4fa   :  { %v1149_v24 = vld [vmem:[%s1528_s6 + $0x18] sm:$0xff]  }
 0x502   :  { %v365_v25 = vpop.f32.mrb[12].mxu0 }
 0x503   :  { %v1046_v26 = vpop.f32.mrb[13].mxu0 }
 0x504   :  { %v368_v27 = vpop.f32.mrb[14].mxu0  ;;  %v1151_v26 = vld [vmem:[%s1528_s6 + $0x28] sm:$0xff]  }
 0x505   :  { %v1121_v29 = vpack.i.bf16 %v368_v27, %v365_v25  ;;  %v1047_v30 = vpop.f32.mrb[15].mxu0  ;;  %v1150_v25 = vld [vmem:[%s1528_s6 + $0x20] sm:$0xff]   ;;  %v1152_v27 = vld [vmem:[%s1528_s6 + $0x30] sm:$0xff]  }
 0x507   :  { %1122 = vrot.lane.b32.xlu0 %v1121_v29, %s1265_s15  ;;  %v731_v29 = vlaneseq }
 0x509   :  { %v732_v30 = vshrl.u32 %v731_v29, 7 }
 0x50a   :  { %v486_v31 = vpop.f32.mrb[16].mxu0 }
 0x50b   :  { %v1058_v32 = vpop.f32.mrb[17].mxu0 }
 0x50c   :  { %v489_v34 = vpop.f32.mrb[18].mxu0  ;;  %v729_v32 = vld [vmem:[%s1527_s5] sm:$0x3] }
 0x50d   :  { %v1126_v35 = vpack.i.bf16 %v489_v34, %v486_v31  ;;  %v1059_v36 = vpop.f32.mrb[19].mxu0  ;;  %v733_v31 = vsub.s32 0, %v732_v30 }
 0x50f   :  { %1127 = vrot.lane.b32.xlu1 %v1126_v35, %s1266_s16  ;;  %v734_v33 = vrot.slane %v729_v32, %v733_v31 }
 0x512   :  { %v607_v37 = vpop.f32.mrb[20].mxu0 }
 0x513   :  { %v1070_v38 = vpop.f32.mrb[21].mxu0 }
 0x514   :  { %v610_v39 = vpop.f32.mrb[22].mxu0 }
 0x515   :  { %v1131_v40 = vpack.i.bf16 %v610_v39, %v607_v37  ;;  %v1071_v41 = vpop.f32.mrb[23].mxu0 }
 0x517   :  { %1132 = vrot.lane.b32.xlu0 %v1131_v40, %s1267_s17 }
 0x579   :  { %v1123_v42 = vpop.permute.xlu0 %1122 }
 0x57a   :  { %v1125_v44 = vunpack.i.h.bf16 %v1123_v42  ;;  %v1124_v45 = vunpack.i.l.bf16 %v1123_v42 }
 0x57c   :  { %v639_v49 = vsel %vm132_vm2, %v247_v22, %v1125_v44  ;;  %v638_v50 = vsel %vm132_vm2, %v244_v20, %v1124_v45  ;;  %v1146_v20 = vld [vmem:[%s1528_s6] sm:$0xff]   ;;  %v1148_v22 = vld [vmem:[%s1528_s6 + $0x10] sm:$0xff]  }
 0x581   :  { %v1128_v43 = vpop.permute.xlu1 %1127 }
 0x582   :  { %v1130_v46 = vunpack.i.h.bf16 %v1128_v43  ;;  %v1129_v47 = vunpack.i.l.bf16 %v1128_v43 }
 0x584   :  { %v641_v53 = vsel %vm180_vm3, %v639_v49, %v1130_v46  ;;  %v640_v54 = vsel %vm180_vm3, %v638_v50, %v1129_v47  ;;  %v737_v47 = vsub.s32 1, %v732_v30 }
 0x589   :  { %v1133_v48 = vpop.permute.xlu0 %1132 }
 0x58a   :  { %v1135_v51 = vunpack.i.h.bf16 %v1133_v48  ;;  %v1134_v52 = vunpack.i.l.bf16 %v1133_v48  ;;  %v738_v48 = vrot.slane %v729_v32, %v737_v47 }
 0x58c   :  { %v644_v55 = vsel %vm642_vm4, %v641_v53, %v1135_v51  ;;  %v643_v56 = vsel %vm642_vm4, %v640_v54, %v1134_v52 }
 0x58d   :  { %v645_v57 = vpack.c.bf16 %v644_v55, %v643_v56 }
 0x58f   :  { %1077 = vmatmul.mubr.msk.bf16.vlgmr.msra.gmra.mrb[12].mxu1 %vm51_vm0, %v645_v57 }
 0x590   :  { %1096 = vmatprep.mubr.msk.bf16.mxu1 %vm1254_vm1, %v1253_v7  ;;  %1081 = vmatpush3.bf16.msra.mxu1 %v1146_v20 }
 0x591   :  { %1082 = vmatprep.subr.bf16.mxu1 %v1253_v7 }
 0x594   :  { %1083 = vmatpush3.bf16.msra.mxu1 %v1147_v21 }
 0x595   :  { %1084 = vmatprep.subr.bf16.mxu1 %v1253_v7 }
 0x598   :  { %1085 = vmatpush3.bf16.msra.mxu1 %v1148_v22 }
 0x599   :  { %1086 = vmatprep.subr.bf16.mxu1 %v1253_v7 }
 0x59c   :  { %1087 = vmatpush3.bf16.msra.mxu1 %v1149_v24 }
 0x59d   :  { %1088 = vmatprep.subr.bf16.mxu1 %v1253_v7 }
 0x5a0   :  { %1089 = vmatpush3.bf16.msra.mxu1 %v1150_v25 }
 0x5a1   :  { %1090 = vmatprep.subr.bf16.mxu1 %v1253_v7 }
 0x5a4   :  { %1091 = vmatpush3.bf16.msra.mxu1 %v1151_v26 }
 0x5a5   :  { %1092 = vmatprep.subr.bf16.mxu1 %v1253_v7 }
 0x5a8   :  { %1093 = vmatpush3.bf16.msra.mxu1 %v1152_v27 }
 0x5a9   :  { %1094 = vmatprep.subr.bf16.mxu1 %v1253_v7 }
 0x5ac   :  { %1095 = vmatpush3.bf16.msra.mxu1 %v1153_v28 }
 0x662   :  { %v699_v58 = vpop.f32.mrb[12].mxu1 }
 0x663   :  { %v1442_v59 = vadd.f32 %v699_v58, %v1352_v17  ;;  %v1078_v60 = vpop.f32.mrb[13].mxu1  ;;  %v1142_v17 = vld [vmem:[%s1526_s4 + $0x4] ss:$8 sps:$4 sm:$0xff]   ;;  %v976_v58 = vld [vmem:[%s1529_s7] ss:$0 sm:$0xff] }
 0x664   :  { %v702_v61 = vpop.f32.mrb[14].mxu1  ;;  %764 = vmatprep.subr.bf16.mxu0 %v1142_v17 }
 0x665   :  { %v1445_v23 = vadd.f32 %v702_v61, %v1354_v18  ;;  %v1079_v62 = vpop.f32.mrb[15].mxu1  ;;  %v708_v63 = vmul.f32 %v1442_v59, %v1442_v59  ;;  %v1140_v18 = vld [vmem:[%s1526_s4] ss:$8 sps:$4 sm:$0xff]  }
 0x666   :  { %765 = vmatpush1.bf16.msra.mxu0 %v1140_v18 }
 0x667   :  { %v710_v0 = vsel %vm51_vm0, %v708_v63, 0.0  ;;  %v709_v1 = vmul.f32 %v1445_v23, %v1445_v23  ;;  %766 = vmatprep.subr.bf16.mxu0 %v1145_v3 }
 0x668   :  { %711 = vadd.xlane.f32.xlu1 %v710_v0 }
 0x669   :  { %v713_v2 = vsel %vm51_vm0, %v709_v1, 0.0 }
 0x66a   :  { %714 = vadd.xlane.f32.xlu0 %v713_v2  ;;  %767 = vmatpush1.bf16.msra.mxu0 %v1143_v4 }
 0x6f5   :  { %v712_v6 = vpop.xlane.xlu1 %711 }
 0x6f6   :  { %v716_v8 = vmul.f32 0.03125, %v712_v6 }
 0x6f7   :  { %v715_v9 = vpop.xlane.xlu0 %714 }
 0x6f8   :  { %v718_v10 = vadd.f32 1e-06, %v716_v8  ;;  %v717_v11 = vmul.f32 0.03125, %v715_v9 }
 0x6fa   :  { %1190 = vrsqrt.f32 %v718_v10  ;;  %v719_v12 = vadd.f32 1e-06, %v717_v11 }
 0x6fc   :  { %1192 = vrsqrt.f32 %v719_v12 }
 0x704   :  { %v1191_v13 = vpop.eup %1190 }
 0x705   :  { %v722_v15 = vmul.f32 %v1191_v13, %v1442_v59 }
 0x706   :  { %v1193_v14 = vpop.eup %1192 }
 0x707   :  { %v723_v16 = vmul.f32 %v1193_v14, %v1445_v23 }
 0x709   :  { %v724_v19 = vpack.c.bf16 %v723_v16, %v722_v15 }
 0x70b   :  { %975 = vmatmul.mubr.msk.bf16.vlgmr.msra.gmra.mrb[24].mxu0 %vm51_vm0, %v724_v19 }
 0x7de   :  { %v798_v34 = vpop.f32.mrb[24].mxu0 }
 0x7df   :  { %v799_v35 = vadd.f32 %v798_v34, %v734_v33  ;;  %v800_v36 = vpop.f32.mrb[25].mxu0 }
 0x7e0   :  { %v802_v37 = vpop.f32.mrb[26].mxu0  ;;  %v801_v51 = vadd.f32 %v800_v36, %v738_v48 }
 0x7e1   :  { %v807_v38 = vsub.f32 0.0, %v799_v35  ;;  %v803_v39 = vadd.f32 %v802_v37, %v734_v33  ;;  %v804_v7 = vpop.f32.mrb[27].mxu0 }
 0x7e2   :  { %v805_v55 = vadd.f32 %v804_v7, %v738_v48 }
 0x7e3   :  { %v809_v40 = vmul.f32 1.442695, %v807_v38  ;;  %v808_v41 = vsub.f32 0.0, %v803_v39 }
 0x7e5   :  { %1194 = vpow2.f32 %v809_v40  ;;  %v811_v42 = vmul.f32 1.442695, %v808_v41 }
 0x7e7   :  { %1196 = vpow2.f32 %v811_v42 }
 0x7ef   :  { %v1195_v43 = vpop.eup %1194 }
 0x7f0   :  { %v813_v44 = vadd.f32 1.0, %v1195_v43 }
 0x7f1   :  { %v1197_v45 = vpop.eup %1196 }
 0x7f2   :  { %1198 = vrcp.f32 %v813_v44  ;;  %v814_v46 = vadd.f32 1.0, %v1197_v45 }
 0x7f4   :  { %1200 = vrcp.f32 %v814_v46 }
 0x7fc   :  { %v1199_v49 = vpop.eup %1198 }
 0x7fd   :  { %v819_v50 = vmul.f32 %v1199_v49, %v799_v35 }
 0x7fe   :  { %v1201_v52 = vpop.eup %1200 }
 0x7ff   :  { %v821_v53 = vmul.f32 %v819_v50, %v801_v51  ;;  %v820_v54 = vmul.f32 %v1201_v52, %v803_v39 }
 0x801   :  { %v822_v56 = vmul.f32 %v820_v54, %v805_v55 }
 0x803   :  { %v823_v57 = vpack.c.bf16 %v822_v56, %v821_v53 }
 0x805   :  { %1097 = vmatmul.mubr.bf16.vlgmr.msra.gmra.mrb[16].mxu1 %v823_v57 }
 0x8d8   :  { %v929_v60 = vpop.f32.mrb[16].mxu1 }
 0x8d9   :  { %v930_v61 = vadd.f32 %v976_v58, %v929_v60  ;;  %v1098_v62 = vpop.f32.mrb[17].mxu1 }
 0x8da   :  { %v932_v63 = vpop.f32.mrb[18].mxu1 }
 0x8db   :  { %v936_v0 = vadd.f32 %v930_v61, %v1442_v59  ;;  %v933_v1 = vadd.f32 %v976_v58, %v932_v63  ;;  %v1099_v2 = vpop.f32.mrb[19].mxu1 }
 0x8dd   :  { %938 = vst.msk [vmem:[#allocation5] sm:$0xff] %vm51_vm0, %v936_v0  ;;  %v937_v17 = vadd.f32 %v933_v1, %v1445_v23 }
 0x8df   :  { %939 = vst.msk [vmem:[#allocation5 + $0x8] sm:$0xff] %vm51_vm0, %v937_v17 }
 0x8e0   :  { %1235 = shalt.err (!%p1232_p12)
}
 0x8e1   :  { %s1236_s22 = scalar_lea.hbm %s1530_s8, 256 }
 0x8e2   :  { %p1237_p13 = scmp.ne.s32.totalorder %s1530_s8, %s1236_s22  ;;  %p1240_p0 = scmp.lt.u32.totalorder %s1236_s22, %s1530_s8 }
 0x8e4   :  { %p1242_p1 = pnand %p1240_p0, %p1237_p13 }
 0x8e6   :  { %1245 = shalt.err (!%p1242_p1)
}
 0x8e7   :  { %s1270_s24 = smov 128  }
 0x8e8   :  { %951 = dma.vmem_to_hbm [thread:$0]  %s946_s19, 256, %s1530_s8, [#allocation4], %s1270_s24, %s1270_s24, %s1265_s15  }
 0x8e9   :  { %1248 = dma.done.wait [#allocation4], 256  }
 0x8ea   :  { %1249 = vsyncadd [#allocation4], 4294967040 }
 0x8eb   :  { %955 = vsyncpa [#allocation3], 1 }
 0x8ec   :  { %956 = vsyncpa [#allocation4], 1 }

</bundles_post_ra>
